<compile_context>
chip_gen: v6e
topology: v6e:2x2x1
jax: 0.10.0
libtpu: 0.0.40
codegen_flags: <defaults>
</compile_context>

<pallas_src>
import jax
import jax.numpy as jnp
from jax import lax
from jax.experimental import pallas as pl
from jax.experimental.pallas import tpu as pltpu


def _largest_tile(total, bytes_per_unit, target_bytes, align):
    """Largest divisor t of `total` (t == total or t % align == 0) fitting the byte budget."""
    t = total
    while t * bytes_per_unit > target_bytes and t % 2 == 0 and (t // 2) % align == 0:
        t //= 2
    return t


# ----------------------------------------------------------------- pass 1: row sums
def _rowsum_kernel(x_ref, o_ref):
    @pl.when(pl.program_id(1) == 0)
    def _():
        o_ref[...] = jnp.zeros_like(o_ref)

    o_ref[...] += jnp.sum(x_ref[...].astype(jnp.float32), axis=-1, keepdims=True)


def _row_sum(x_flat, target_bytes=2 << 20):
    """x_flat: (N, C, S) -> (N, C) float32 sums over S, tiled over S."""
    n, c, s = x_flat.shape
    ts = _largest_tile(s, c * x_flat.dtype.itemsize, target_bytes, align=128)
    out = pl.pallas_call(
        _rowsum_kernel,
        out_shape=jax.ShapeDtypeStruct((n, c, 1), jnp.float32),
        grid=(n, s // ts),
        in_specs=[pl.BlockSpec((None, c, ts), lambda i, j: (i, 0, j))],
        out_specs=pl.BlockSpec((None, c, 1), lambda i, j: (i, 0, 0)),
        compiler_params=pltpu.CompilerParams(
            dimension_semantics=("parallel", "arbitrary")),
    )(x_flat)
    return out[:, :, 0]


# ----------------------------------------------------------- pass 2: gated fusion
def _fuse_kernel(v_ref, x0_ref, x1_ref, o_ref):
    # v_ref: (C,1,1) f32 gate;  x0_ref: (C,TH,W) low-res block;
    # x1_ref / o_ref: (C,TH,4W) view block where the last dim packs (rh, 2W).
    c, th, w = x0_ref.shape

    # 0/1 selection matrix: output lane m reads input lane m//2 (first 2W half, rh=0)
    # or m//2 - W (second 2W half, rh=1)  ==  nearest 2x upsample along W, duplicated
    # for both rh values of the packed layout.
    col = lax.broadcasted_iota(jnp.int32, (w, 4 * w), 1) // 2
    row = lax.broadcasted_iota(jnp.int32, (w, 4 * w), 0)
    sel = jnp.where(jnp.logical_or(col == row, col == row + w), 1.0, 0.0)
    sel = sel.astype(jnp.bfloat16)

    x0 = x0_ref[...].astype(jnp.float32).reshape(c * th, w)
    x_hi = x0.astype(jnp.bfloat16)                                  # exact bf16 part
    x_lo = (x0 - x_hi.astype(jnp.float32)).astype(jnp.bfloat16)     # residual
    up = (jnp.dot(x_hi, sel, preferred_element_type=jnp.float32)
          + jnp.dot(x_lo, sel, preferred_element_type=jnp.float32))
    up = up.reshape(c, th, 4 * w)                                   # upsampled x1 block

    v = v_ref[...]                                                  # (C,1,1), broadcasts
    xin = x1_ref[...].astype(jnp.float32)
    o_ref[...] = (up * v + xin * (1.0 - v)).astype(o_ref.dtype)


def feature_fusion(in0, in1, fc1_w, fc1_b, fc2_w, fc2_b):
    """in0: (N,C,D,H,W); in1: (N,C,2D,2H,2W); returns (N,C,2D,2H,2W) with in1.dtype."""
    n, c, d, h, w = in0.shape
    assert in1.shape == (n, c, 2 * d, 2 * h, 2 * w), in1.shape
    units = fc1_w.shape[0]
    assert fc1_w.shape == (units, c) and fc2_w.shape == (units, units)
    assert fc1_b.shape == (units,) and fc2_b.shape == (units,)
    # expand_as in the reference module requires the gate width to equal C.
    assert units == c, "FeatureFusion requires units == channels"

    s0, s1 = d * h * w, 8 * d * h * w

    # ---- pass 1: gate.  mean(upsample(in0) + in1) == mean(in0) + mean(in1)   (exact).
    mean = _row_sum(in0.reshape(n, c, s0)) / s0 + _row_sum(in1.reshape(n, c, s1)) / s1
    hid = jnp.maximum(mean @ fc1_w.astype(jnp.float32).T + fc1_b.astype(jnp.float32), 0.0)
    v = jax.nn.sigmoid(hid @ fc2_w.astype(jnp.float32).T + fc2_b.astype(jnp.float32))
    v4 = v.reshape(n, c, 1, 1).astype(jnp.float32)

    # ---- pass 2: streaming gated fusion with the 2x upsample fused in VMEM.
    # Free reshape view: (N,C,2D,2H,2W) -> (N,C,D,2,H,4W).  The two size-2 factors
    # (depth / height repeats) become a grid axis / lane duplication; width repeat is the
    # in-kernel selection matmul.  rd is the innermost grid axis so the small in0 block
    # keeps the same index on consecutive steps (its re-fetch is elided).
    in1_v = in1.reshape(n, c, d, 2, h, 4 * w)
    # TODO(synk): if H has no multiple-of-8 tiling, th falls back to full H rows.
    th = _largest_tile(h, c * 4 * w * in1.dtype.itemsize, 1 << 20, align=8)

    out_v = pl.pallas_call(
        _fuse_kernel,
        out_shape=jax.ShapeDtypeStruct((n, c, d, 2, h, 4 * w), in1.dtype),
        grid=(n, d, h // th, 2),
        in_specs=[
            pl.BlockSpec((None, c, 1, 1), lambda ni, di, hi, ri: (ni, 0, 0, 0)),
            pl.BlockSpec((None, c, None, th, w),
                         lambda ni, di, hi, ri: (ni, 0, di, hi, 0)),
            pl.BlockSpec((None, c, None, None, th, 4 * w),
                         lambda ni, di, hi, ri: (ni, 0, di, ri, hi, 0)),
        ],
        out_specs=pl.BlockSpec((None, c, None, None, th, 4 * w),
                               lambda ni, di, hi, ri: (ni, 0, di, ri, hi, 0)),
        compiler_params=pltpu.CompilerParams(
            dimension_semantics=("parallel", "parallel", "parallel", "parallel")),
    )(v4, in0, in1_v)

    return out_v.reshape(in1.shape)


def _reference(in0, in1, w1, b1, w2, b2):
    # Pure-JAX reference matching the PyTorch forward.
    x1 = jnp.repeat(jnp.repeat(jnp.repeat(in0, 2, axis=2), 2, axis=3), 2, axis=4)
    x2 = x1 + in1
    vmean = jnp.mean(x2, axis=(2, 3, 4))
    v = jnp.maximum(vmean @ w1.T + b1, 0.0)
    v = jax.nn.sigmoid(v @ w2.T + b2)
    v5 = v[:, :, None, None, None]
    return x1 * v5 + in1 * (1.0 - v5)


if __name__ == "__main__":
    key = jax.random.PRNGKey(0)
    k0, k1, k2, k3, k4, k5 = jax.random.split(key, 6)

    N, C, D, H, W = 2, 4, 4, 8, 8          # in1 spatial = (8, 16, 16); units == C.
    units = C

    in0 = jax.random.normal(k0, (N, C, D, H, W), jnp.float32)
    in1 = jax.random.normal(k1, (N, C, 2 * D, 2 * H, 2 * W), jnp.float32)
    fc1_w = jax.random.normal(k2, (units, C), jnp.float32) * 0.1
    fc1_b = jax.random.normal(k3, (units,), jnp.float32) * 0.1
    fc2_w = jax.random.normal(k4, (units, units), jnp.float32) * 0.1
    fc2_b = jax.random.normal(k5, (units,), jnp.float32) * 0.1

    out = feature_fusion(in0, in1, fc1_w, fc1_b, fc2_w, fc2_b)
    out = jax.block_until_ready(out)

    ref = _reference(in0, in1, fc1_w, fc1_b, fc2_w, fc2_b)
    assert out.shape == in1.shape
    assert out.dtype == in1.dtype
    assert jnp.allclose(out, ref, atol=1e-4, rtol=1e-4), float(jnp.max(jnp.abs(out - ref)))
    print("KERNEL_OK")
</pallas_src>

<mosaic_0001>
module attributes {stable_mosaic.version = 11 : i64} {
  func.func @_rowsum_kernel(%arg0: i32, %arg1: i32, %arg2: memref<1x4x256xf32, #tpu.memory_space<vmem>>, %arg3: memref<1x4x1xf32, #tpu.memory_space<vmem>>) attributes {dimension_semantics = [#tpu.dimension_semantics<parallel>, #tpu.dimension_semantics<arbitrary>], iteration_bounds = array<i64: 2, 1>, scalar_prefetch = 0 : i64, scratch_operands = 0 : i64, tpu.core_type = #tpu.core_type<tc>, window_params = [{transform_indices = @transform_0, window_bounds = array<i64: 1, 4, 256>}, {transform_indices = @transform_1, window_bounds = array<i64: 1, 4, 1>}]} {
    %c0_i32 = arith.constant 0 : i32
    %0 = arith.cmpi eq, %arg1, %c0_i32 : i32
    %1 = arith.extui %0 : i1 to i32
    %c0_i32_0 = arith.constant 0 : i32
    %2 = arith.cmpi ne, %1, %c0_i32_0 : i32
    scf.if %2 {
      %cst_9 = arith.constant 0.000000e+00 : f32
      %13 = vector.broadcast %cst_9 : f32 to vector<4x1xf32>
      %c0_10 = arith.constant 0 : index
      %c0_11 = arith.constant 0 : index
      %c0_12 = arith.constant 0 : index
      %14 = vector.load %arg3[%c0_10, %c0_11, %c0_12] : memref<1x4x1xf32, #tpu.memory_space<vmem>>, vector<1x4x1xf32>
      %15 = vector.shape_cast %14 : vector<1x4x1xf32> to vector<4x1xf32>
      %16 = vector.shape_cast %13 : vector<4x1xf32> to vector<1x4x1xf32>
      tpu.vector_store %arg3[%c0_10, %c0_11, %c0_12], %16 {strides = array<i32>} : memref<1x4x1xf32, #tpu.memory_space<vmem>>, vector<1x4x1xf32>,
    } else {
    }
    %c0 = arith.constant 0 : index
    %c0_1 = arith.constant 0 : index
    %c0_2 = arith.constant 0 : index
    %3 = vector.load %arg3[%c0, %c0_1, %c0_2] : memref<1x4x1xf32, #tpu.memory_space<vmem>>, vector<1x4x1xf32>
    %4 = vector.shape_cast %3 : vector<1x4x1xf32> to vector<4x1xf32>
    %c0_3 = arith.constant 0 : index
    %c0_4 = arith.constant 0 : index
    %c0_5 = arith.constant 0 : index
    %5 = vector.load %arg2[%c0_3, %c0_4, %c0_5] : memref<1x4x256xf32, #tpu.memory_space<vmem>>, vector<1x4x256xf32>
    %6 = vector.shape_cast %5 : vector<1x4x256xf32> to vector<4x256xf32>
    %cst = arith.constant dense<0.000000e+00> : vector<4xf32>
    %7 = vector.multi_reduction <add>, %6, %cst [1] : vector<4x256xf32> to vector<4xf32>
    %8 = vector.shape_cast %7 : vector<4xf32> to vector<4x1xf32>
    %9 = arith.addf %4, %8 : vector<4x1xf32>
    %c0_6 = arith.constant 0 : index
    %c0_7 = arith.constant 0 : index
    %c0_8 = arith.constant 0 : index
    %10 = vector.load %arg3[%c0_6, %c0_7, %c0_8] : memref<1x4x1xf32, #tpu.memory_space<vmem>>, vector<1x4x1xf32>
    %11 = vector.shape_cast %10 : vector<1x4x1xf32> to vector<4x1xf32>
    %12 = vector.shape_cast %9 : vector<4x1xf32> to vector<1x4x1xf32>
    tpu.vector_store %arg3[%c0_6, %c0_7, %c0_8], %12 {strides = array<i32>} : memref<1x4x1xf32, #tpu.memory_space<vmem>>, vector<1x4x1xf32>,
    return
  }
  func.func @transform_0(%arg0: i32, %arg1: i32) -> (i32, i32, i32) {
    %c0_i32 = arith.constant 0 : i32
    %c0_i32_0 = arith.constant 0 : i32
    return %arg0, %c0_i32, %arg1 : i32, i32, i32
  }
  func.func @transform_1(%arg0: i32, %arg1: i32) -> (i32, i32, i32) {
    %c0_i32 = arith.constant 0 : i32
    %c0_i32_0 = arith.constant 0 : i32
    %c0_i32_1 = arith.constant 0 : i32
    return %arg0, %c0_i32, %c0_i32_0 : i32, i32, i32
  }
}

</mosaic_0001>

<bundles_post_ra>
// kernel: tpu_custom_call.1
= control target key start
LH: loop header
LB: loop body
LE: loop exit
PB: predicated region body
PF: predicated region fallthrough
CT: control target
= control target key end

     0   :  { %6 = vsyncpa [#allocation3], 0  ;;  %s508_s0 = inlined_call_operand.hbm [shape: f32[2,4,256], index: 0, kind: input, shape index: {}]   ;;  %s509_s1 = inlined_call_operand.vmem [shape: f32[2,4,1], index: 1, kind: output, shape index: {}]  }
   0x1   :  { %8 = vsyncpa [#allocation3 + $0x1], 0  ;;  %s408_s6 = smov 0   ;;  %s410_s7 = smov 0  }
   0x2   :  { %s412_s8 = smov 0   ;;  %s414_s9 = smov 0  }
   0x3   :  { %s416_s10 = smov 0   ;;  %s418_s11 = smov 0  }
   0x4 LB: > { %s246_s12 = sadd.s32 4294967295, %s394_s11   ;;  %s26_s13 = sadd.s32 1, %s390_s10  ;;  %s394_s11 = sphi %s418_s11, %s14_s11   ;;  %s390_s10 = sphi %s416_s10, %s517_s10   ;;  %s386_s9 = sphi %s414_s9, %s516_s9   ;;  %s382_s8 = sphi %s412_s8, %s515_s8   ;;  %s378_s7 = sphi %s410_s7, %s514_s7   ;;  %s374_s6 = sphi %s408_s6, %s513_s6  }
   0x5   : > { %p28_p0 = scmp.ge.s32.totalorder %s26_s13, 2  ;;  %s35_s14 = sadd.s32 1, %s382_s8 }
   0x6   : > { %p42_p1 = scmp.ne.s32.totalorder %s382_s8, %s378_s7  ;;  %p43_p2 = scmp.eq.s32.totalorder %s394_s11, 0 }
   0x7   : > { %s519_s13 = smov (%p28_p0, %s26_s13), 0  ;;  %p48_p4 = scmp.ne.s32.totalorder %s378_s7, %s374_s6 }
   0x8   : > { %p444_p3 = por %p43_p2, %p42_p1  ;;  %s30_s16 = ssub.s32 %s390_s10, %s519_s13 }
   0x9   : > { %p49_p5 = scmp.eq.s32.totalorder %s246_s12, 0  ;;  %p33_p6 = scmp.eq.s32.totalorder %s30_s16, 0 }
   0xa   : > { %p265_p8 = scmp.lt.s32.totalorder %s394_s11, 2  ;;  %s98_s19 = sand.u32 1, %s382_s8  }
   0xb   : > { %p451_p7 = por %p49_p5, %p48_p4  ;;  %s258_s20 = sshll.u32 %s390_s10, 7 }
   0xc   : > { %s457_s18 = scalar_select %p33_p6, %s382_s8, %s35_s14  }
   0xd   : > { %s250_s21 = sshll.u32 %s98_s19, 3  ;;  %s110_s24 = scalar_lea.hbm %s508_s0, %s258_s20 }
   0xe   : > { %s102_s25 = scalar_lea.vmem [#allocation2], %s250_s21  ;;  %p466_p9 = pnand %p265_p8, %p444_p3 }
   0xf   : > { %s112_s26 = sshll.u32 %s102_s25, 4  ;;  %p253_p10 = scmp.ge.s32.totalorder %s394_s11, 1  ;;  %s113_s26 = int_to_ptr.vmem [resolvable:$true] %s112_s26 }
  0x10   : > { %p117_p11 = scmp.lt.s32.totalorder %s394_s11, 3  ;;  %s99_s28 = scalar_lea.sflag [#allocation3], %s98_s19 }
  0x11   : > { %p318_p12 = pneg %p466_p9  ;;  %s329_s29 = scalar_lea.vmem %s113_s26, 128 }
  0x12   : > { %p330_p13 = scmp.ne.s32.totalorder %s113_s26, %s329_s29  ;;  %s396_s30 = smov [#allocation2]  }
  0x13   : > { %s334_s2 = sshll.u32 %s396_s30, 4  ;;  %s335_s2 = int_to_ptr.vmem [resolvable:$false] %s334_s2 }
  0x14   : > { %p332_p0 = pnand %p330_p13, %p318_p12  ;;  %s336_s3 = scalar_lea.vmem %s335_s2, 256 }
  0x15   : > { %p337_p2 = scmp.lt.s32.totalorder %s113_s26, %s335_s2  ;;  %p338_p3 = scmp.lt.s32.totalorder %s336_s3, %s329_s29 }
  0x16   : > { %p333_p1 = pneg %p332_p0 }
  0x17   : > { %p339_p4 = por %p338_p3, %p337_p2 }
  0x19   : > { %p340_p5 = pnand %p339_p4, %p333_p1 }
  0x1b   : > { %343 = shalt.err (!%p340_p5)
}
  0x1c   : > { %264 = dma.hbm_to_vmem [thread:$0]  (!%p466_p9), %s110_s24, 128, %s113_s26, %s99_s28  }
  0x1d   : > { %p118_p6 = pnand %p253_p10, %p117_p11 }
  0x1e   : > { %s123_s4 = sand.u32 (!%p118_p6), 1, %s378_s7  }
  0x1f   : > { %121 = sbr.rel (%p118_p6) target bundleno = 184 (0xb8), region = 24  ;;  %s254_s5 = sshll.u32 (!%p118_p6), %s123_s4, 3 }
  0x20   : > { %s124_s6 = scalar_lea.sflag (!%p118_p6), [#allocation3], %s123_s4  ;;  %s127_s12 = scalar_lea.vmem (!%p118_p6), [#allocation2], %s254_s5 }
  0x24   : > { %369 = dma.done.wait (%p451_p7), %s124_s6, 128  }
  0x25   : > { %371 = vsyncadd (%p451_p7), %s124_s6, 4294967168  ;;  %p146_p8 = scmp.lt.s32.totalorder %s386_s9, 1  ;;  %vm154_vm0 = vcmask 3072   ;;  %vm161_vm1 = vcmask 1043456   ;;  %v397_v0 = vmov 0.0   ;;  %v157_v1 = vld [vmem:[%s127_s12] sm:$0xff] }
  0x26   : > { %v159_v2 = vcombine.high %v157_v1, %v157_v1  ;;  %v162_v3 = vsel %vm161_vm1, %v157_v1, 0.0 }
  0x27   : > { %s521_s9 = smov (!%p146_p8, %s386_s9), 1 }
  0x28   : > { %s255_s14 = sshll.u32 %s521_s9, 2  ;;  %v163_v4 = vsel %vm161_vm1, %v159_v2, 0.0 }
  0x29   : > { %s149_s19 = scalar_lea.vmem %s509_s1, %s255_s14  ;;  %v164_v5 = vadd.f32 %v163_v4, %v162_v3 }
  0x2a   : > { %155 = vst.msk [vmem:[%s149_s19] sm:$0xf] %vm154_vm0, %v397_v0 }
  0x2b   : > { %165 = vadd.xlane.f32.xlu0 %v164_v5 }
  0x31   : > { %v156_v6 = vld [vmem:[%s149_s19] sm:$0xf] }
  0xb4   : > { %v166_v7 = vpop.xlane.xlu0 %165 }
  0xb5   : > { %v167_v8 = vadd.f32 %v166_v7, %v156_v6 }
  0xb7   : > { %169 = vst.msk [vmem:[%s149_s19] sm:$0xf] %vm154_vm0, %v167_v8 }
  0xb8 PF: > { %s14_s11 = sadd.s32 1, %s394_s11   ;;  %s513_s6 = smov %s378_s7 }
  0xb9   : > { %p11_p7 = scmp.ge.s32.totalorder %s14_s11, 4   ;;  %s514_s7 = smov %s382_s8 }
  0xba   : > { %s515_s8 = smov %s457_s18  ;;  %s516_s9 = smov %s390_s10 }
  0xbb   : > { %s517_s10 = smov %s519_s13  ;;  %13 = sbr.rel (!%p11_p7) target bundleno = 4 (0x4), region = 68 }
  0xc0   :  { %189 = vsyncpa [#allocation3], 1 }
  0xc1   :  { %191 = vsyncpa [#allocation3 + $0x1], 1 }

</bundles_post_ra>
